<compile_context>
chip_gen: v5e
topology: v5e:2x2
jax: 0.10.0
libtpu: 0.0.40
codegen_flags: <defaults>
</compile_context>

<pallas_src>
import functools
import math

import jax
import jax.numpy as jnp
from jax.experimental import pallas as pl
from jax.experimental.pallas import tpu as pltpu


# ---------------------------- in-kernel helpers -----------------------------

def _layernorm(x, gamma, beta, eps):
    mean = jnp.mean(x, axis=-1, keepdims=True)
    var = jnp.mean((x - mean) ** 2, axis=-1, keepdims=True)
    return (x - mean) * jax.lax.rsqrt(var + eps) * gamma + beta


def _gelu_erf(x):
    # BERT uses erf-GELU.
    return 0.5 * x * (1.0 + jax.lax.erf(x * (1.0 / math.sqrt(2.0))))


# ----------- fused embedding gather + embedding add + LayerNorm -------------

def _embed_ln_kernel(ids_ref, tt_ref,                 # scalar-prefetch (SMEM)
                     pos_ref, g_ref, b_ref,           # VMEM blocks
                     word_hbm, type_hbm,              # raw HBM tables (pl.ANY)
                     o_ref,                           # output block
                     wbuf, tbuf, wsem, tsem,          # scratch
                     *, S, eps):
    b = pl.program_id(0)
    base = b * S

    def word_copy(s):
        return pltpu.make_async_copy(
            word_hbm.at[pl.ds(ids_ref[base + s], 1), :],
            wbuf.at[pl.ds(s, 1), :], wsem.at[s])

    def type_copy(s):
        return pltpu.make_async_copy(
            type_hbm.at[pl.ds(tt_ref[base + s], 1), :],
            tbuf.at[pl.ds(s, 1), :], tsem.at[s])

    # Start all row-gather DMAs, then wait them all (overlapped gather).
    def _start(s, c):
        word_copy(s).start()
        type_copy(s).start()
        return c
    jax.lax.fori_loop(0, S, _start, 0, unroll=True)

    def _wait(s, c):
        word_copy(s).wait()
        type_copy(s).wait()
        return c
    jax.lax.fori_loop(0, S, _wait, 0, unroll=True)

    x = wbuf[...] + tbuf[...] + pos_ref[...]
    o_ref[...] = _layernorm(x, g_ref[...], b_ref[...], eps)


def embed_layernorm(word_emb, type_emb, pos_e, gamma, beta,
                    input_ids, token_type_ids, B, S, H):
    ids_flat = input_ids.reshape(-1).astype(jnp.int32)
    tt_flat = token_type_ids.reshape(-1).astype(jnp.int32)
    kernel = functools.partial(_embed_ln_kernel, S=S, eps=1e-12)
    return pl.pallas_call(
        kernel,
        out_shape=jax.ShapeDtypeStruct((B * S, H), jnp.float32),
        grid_spec=pltpu.PrefetchScalarGridSpec(
            num_scalar_prefetch=2,
            grid=(B,),
            in_specs=[
                pl.BlockSpec((S, H), lambda b, ids, tts: (0, 0)),   # position emb (shared)
                pl.BlockSpec((1, H), lambda b, ids, tts: (0, 0)),   # LN gamma
                pl.BlockSpec((1, H), lambda b, ids, tts: (0, 0)),   # LN beta
                pl.BlockSpec(memory_space=pl.ANY),                  # word table (HBM)
                pl.BlockSpec(memory_space=pl.ANY),                  # type table (HBM)
            ],
            out_specs=pl.BlockSpec((S, H), lambda b, ids, tts: (b, 0)),
            scratch_shapes=[
                pltpu.VMEM((S, H), jnp.float32),     # gathered word rows
                pltpu.VMEM((S, H), jnp.float32),     # gathered type rows
                pltpu.SemaphoreType.DMA((S,)),
                pltpu.SemaphoreType.DMA((S,)),
            ]),
        compiler_params=pltpu.CompilerParams(dimension_semantics=("parallel",)),
    )(ids_flat, tt_flat, pos_e, gamma.reshape(1, H), beta.reshape(1, H),
      word_emb, type_emb)


# ------------------------- fused BERT encoder layer -------------------------

def _encoder_layer_kernel(x_ref, mask_ref,
                          wqkv_ref, bqkv_ref, wo_ref, bo_ref,
                          ln1_g_ref, ln1_b_ref,
                          w1_ref, b1_ref, w2_ref, b2_ref,
                          ln2_g_ref, ln2_b_ref,
                          o_ref,
                          *, num_heads, head_dim, scale, eps):
    x = x_ref[...]                                    # (S, H) f32
    mask = mask_ref[...]                              # (1, S) additive (0 / -10000)
    S = x.shape[0]
    H = num_heads * head_dim

    # Fused QKV projection (bf16 MXU inputs, f32 accumulation).
    qkv = jnp.dot(x.astype(jnp.bfloat16), wqkv_ref[...],
                  preferred_element_type=jnp.float32) + bqkv_ref[...]   # (S, 3H) f32

    # 1/sqrt(dH) folded into q once (cheaper than scaling the (nH,S,S) scores).
    q = (qkv[:, :H] * scale).reshape(S, num_heads, head_dim)
    k = qkv[:, H:2 * H].reshape(S, num_heads, head_dim)
    v = qkv[:, 2 * H:].reshape(S, num_heads, head_dim)
    qh = jnp.swapaxes(q, 0, 1).astype(jnp.bfloat16)   # (nH, S, dH) bf16
    kh = jnp.swapaxes(k, 0, 1).astype(jnp.bfloat16)
    vh = jnp.swapaxes(v, 0, 1).astype(jnp.bfloat16)

    # Attention batched over heads: contraction over last dims, no explicit .T,
    # no per-head lane slicing.  bf16 operands, f32 accumulation.
    s = jnp.einsum("hqd,hkd->hqk", qh, kh,
                   preferred_element_type=jnp.float32) + mask           # (nH,S,S)
    s = s - jnp.max(s, axis=-1, keepdims=True)
    p = jnp.exp(s)
    p = p * pl.reciprocal(jnp.sum(p, axis=-1, keepdims=True), approx=True)
    ctx = jnp.einsum("hqk,hkd->hqd", p.astype(jnp.bfloat16), vh,
                     preferred_element_type=jnp.float32)                # (nH,S,dH)

    # Re-assemble heads and do ONE full-K (S,H)@(H,H) output projection.
    ctx = jnp.swapaxes(ctx, 0, 1).reshape(S, H)
    attn_out = jnp.dot(ctx.astype(jnp.bfloat16), wo_ref[...],
                       preferred_element_type=jnp.float32) + bo_ref[...]

    # Residual + LayerNorm 1 (f32).
    x1 = _layernorm(x + attn_out, ln1_g_ref[...], ln1_b_ref[...], eps)

    # FFN: GELU(x1 @ w1 + b1) @ w2 + b2 (bf16 MXU inputs, f32 accumulation).
    h1 = _gelu_erf(jnp.dot(x1.astype(jnp.bfloat16), w1_ref[...],
                           preferred_element_type=jnp.float32) + b1_ref[...])
    h2 = jnp.dot(h1.astype(jnp.bfloat16), w2_ref[...],
                 preferred_element_type=jnp.float32) + b2_ref[...]

    # Residual + LayerNorm 2 (f32).
    o_ref[...] = _layernorm(x1 + h2, ln2_g_ref[...], ln2_b_ref[...], eps)


def encoder_layer(x, p, ext_mask, B, S, cfg):
    H, nH, dH, I = cfg["hidden"], cfg["heads"], cfg["head_dim"], cfg["intermediate"]

    def wfull(shape):
        # Constant block index across the grid -> single-buffered (halves
        # weight VMEM residency; matters for v7x's 64 MiB VMEM at real scale).
        return pl.BlockSpec(shape, lambda b, _n=len(shape): (0,) * _n,
                            pipeline_mode=pl.Buffered(1))

    kernel = functools.partial(
        _encoder_layer_kernel, num_heads=nH, head_dim=dH,
        scale=float(1.0 / math.sqrt(dH)), eps=1e-12)

    return pl.pallas_call(
        kernel,
        out_shape=jax.ShapeDtypeStruct((B * S, H), jnp.float32),
        grid=(B,),
        in_specs=[
            pl.BlockSpec((S, H), lambda b: (b, 0)),            # x (per batch)
            pl.BlockSpec((None, 1, S), lambda b: (b, 0, 0)),   # additive mask
            wfull((H, 3 * H)), wfull((1, 3 * H)),              # wqkv, bqkv
            wfull((H, H)), wfull((1, H)),                      # wo, bo
            wfull((1, H)), wfull((1, H)),                      # ln1 gamma/beta
            wfull((H, I)), wfull((1, I)),                      # w1, b1
            wfull((I, H)), wfull((1, H)),                      # w2, b2
            wfull((1, H)), wfull((1, H)),                      # ln2 gamma/beta
        ],
        out_specs=pl.BlockSpec((S, H), lambda b: (b, 0)),
        compiler_params=pltpu.CompilerParams(
            dimension_semantics=("parallel",),
            vmem_limit_bytes=32 * 1024 * 1024),
    )(x, ext_mask,
      p["wqkv"], p["bqkv"], p["wo"], p["bo"],
      p["ln1_g"], p["ln1_b"], p["w1"], p["b1"], p["w2"], p["b2"],
      p["ln2_g"], p["ln2_b"])


# --------------------- fused pooler (tanh) + output linear ------------------

def _pooler_head_kernel(cls_ref, wp_ref, bp_ref, wout_ref, bout_ref, o_ref):
    cls = cls_ref[...]
    pooled = jnp.tanh(jnp.dot(cls.astype(jnp.bfloat16), wp_ref[...],
                              preferred_element_type=jnp.float32) + bp_ref[...])
    o_ref[...] = jnp.dot(pooled.astype(jnp.bfloat16), wout_ref[...],
                         preferred_element_type=jnp.float32) + bout_ref[...]


def pooler_head(cls, wp, bp, wout_pad, bout_pad):
    B, H = cls.shape
    Np = wout_pad.shape[1]                            # lane-dense padded width

    def full(shape):
        return pl.BlockSpec(shape, lambda i, _n=len(shape): (0,) * _n)

    return pl.pallas_call(
        _pooler_head_kernel,
        out_shape=jax.ShapeDtypeStruct((B, Np), jnp.float32),
        grid=(1,),
        in_specs=[full((B, H)), full((H, H)), full((1, H)),
                  full((H, Np)), full((1, Np))],
        out_specs=full((B, Np)),
    )(cls, wp, bp.reshape(1, H), wout_pad, bout_pad.reshape(1, Np))


# ------------------------------ BERT forward --------------------------------

def bert_model_forward(params, input_ids, attention_mask, token_type_ids, cfg):
    B, S = input_ids.shape
    H = cfg["hidden"]

    x = embed_layernorm(params["word_emb"], params["type_emb"],
                        params["pos_emb"][:S],
                        params["emb_ln_g"], params["emb_ln_b"],
                        input_ids, token_type_ids, B, S, H)

    # HuggingFace-style extended additive attention mask, shape (B, 1, S).
    ext_mask = ((1.0 - attention_mask.astype(jnp.float32)) * -10000.0).reshape(B, 1, S)

    for p in params["layers"]:
        x = encoder_layer(x, p, ext_mask, B, S, cfg)

    cls = x.reshape(B, S, H)[:, 0, :]                                    # [CLS]
    out_pad = pooler_head(cls, params["pooler_w"], params["pooler_b"],
                          params["out_w_pad"], params["out_b_pad"])
    return out_pad[:, :cfg["out"]]      # slice off lane-padding (300 of 384)


# ---------------------------- parameter init --------------------------------

def _dense(key, fan_in, fan_out):
    return jax.random.normal(key, (fan_in, fan_out), jnp.float32) * 0.02


def init_params(key, cfg):
    H, I, L = cfg["hidden"], cfg["intermediate"], cfg["layers"]
    out_pad = ((cfg["out"] + 127) // 128) * 128       # lane-dense output width
    keys = jax.random.split(key, 8 + L)
    out_w = _dense(keys[4], H, cfg["out"])
    params = {
        "word_emb": jax.random.normal(keys[0], (cfg["vocab"], H), jnp.float32) * 0.02,
        "pos_emb": jax.random.normal(keys[1], (cfg["max_pos"], H), jnp.float32) * 0.02,
        "type_emb": jax.random.normal(keys[2], (cfg["type_vocab"], H), jnp.float32) * 0.02,
        "emb_ln_g": jnp.ones((H,), jnp.float32),
        "emb_ln_b": jnp.zeros((H,), jnp.float32),
        "pooler_w": _dense(keys[3], H, H).astype(jnp.bfloat16),
        "pooler_b": jnp.zeros((H,), jnp.float32),
        # output projection padded 300 -> 384 columns (multiple of 128); the
        # wrapper slices the padding away.
        "out_w_pad": jnp.pad(out_w, ((0, 0), (0, out_pad - cfg["out"]))).astype(jnp.bfloat16),
        "out_b_pad": jnp.zeros((out_pad,), jnp.float32),
        "layers": [],
    }
    for l in range(L):
        lk = jax.random.split(keys[8 + l], 6)
        wq, wk, wv = _dense(lk[0], H, H), _dense(lk[1], H, H), _dense(lk[2], H, H)
        params["layers"].append({
            # fused QKV weight: one (H, 3H) matmul instead of three (H, H).
            "wqkv": jnp.concatenate([wq, wk, wv], axis=1).astype(jnp.bfloat16),
            "bqkv": jnp.zeros((1, 3 * H), jnp.float32),
            "wo": _dense(lk[3], H, H).astype(jnp.bfloat16),
            "bo": jnp.zeros((1, H), jnp.float32),
            "ln1_g": jnp.ones((1, H), jnp.float32),
            "ln1_b": jnp.zeros((1, H), jnp.float32),
            "w1": _dense(lk[4], H, I).astype(jnp.bfloat16),
            "b1": jnp.zeros((1, I), jnp.float32),
            "w2": _dense(lk[5], I, H).astype(jnp.bfloat16),
            "b2": jnp.zeros((1, H), jnp.float32),
            "ln2_g": jnp.ones((1, H), jnp.float32),
            "ln2_b": jnp.zeros((1, H), jnp.float32),
        })
    return params


# ---------------------------------- main -------------------------------------

if __name__ == "__main__":
    cfg = dict(hidden=32, heads=4, head_dim=8, intermediate=64, layers=2,
               vocab=100, max_pos=32, type_vocab=2, out=300)
    B, S = 2, 8

    key = jax.random.PRNGKey(0)
    k_params, k_ids = jax.random.split(key)
    params = init_params(k_params, cfg)

    text_data = jax.random.randint(k_ids, (B, S), 0, cfg["vocab"], dtype=jnp.int32)
    attention_masks = jnp.array([[1] * S, [1] * (S - 3) + [0] * 3], dtype=jnp.int32)
    token_type_ids = jnp.zeros((B, S), dtype=jnp.int32)

    out = bert_model_forward(params, text_data, attention_masks, token_type_ids, cfg)
    out = jax.block_until_ready(out)

    assert out.shape == (B, cfg["out"]), out.shape
    assert out.dtype == jnp.float32
    assert bool(jnp.all(jnp.isfinite(out)))
    print("KERNEL_OK")
</pallas_src>

<mosaic_0001>
module attributes {stable_mosaic.version = 11 : i64} {
  func.func @_embed_ln_kernel(%arg0: i32, %arg1: memref<16xi32, #tpu.memory_space<smem>>, %arg2: memref<16xi32, #tpu.memory_space<smem>>, %arg3: memref<8x32xf32, #tpu.memory_space<vmem>>, %arg4: memref<1x32xf32, #tpu.memory_space<vmem>>, %arg5: memref<1x32xf32, #tpu.memory_space<vmem>>, %arg6: memref<100x32xf32, #tpu.memory_space<any>>, %arg7: memref<2x32xf32, #tpu.memory_space<any>>, %arg8: memref<8x32xf32, #tpu.memory_space<vmem>>, %arg9: memref<8x32xf32, #tpu.memory_space<vmem>>, %arg10: memref<8x32xf32, #tpu.memory_space<vmem>>, %arg11: memref<8x!tpu.dma_semaphore, #tpu.memory_space<semaphore_mem>>, %arg12: memref<8x!tpu.dma_semaphore, #tpu.memory_space<semaphore_mem>>) attributes {dimension_semantics = [#tpu.dimension_semantics<parallel>], iteration_bounds = array<i64: 2>, scalar_prefetch = 2 : i64, scratch_operands = 4 : i64, tpu.core_type = #tpu.core_type<tc>, window_params = [{pipeline_mode = #tpu.pipeline_mode<synchronous>, transform_indices = @transform_0, window_bounds = array<i64: 8, 32>}, {pipeline_mode = #tpu.pipeline_mode<synchronous>, transform_indices = @transform_1, window_bounds = array<i64: 1, 32>}, {pipeline_mode = #tpu.pipeline_mode<synchronous>, transform_indices = @transform_2, window_bounds = array<i64: 1, 32>}, {}, {}, {transform_indices = @transform_5, window_bounds = array<i64: 8, 32>}]} {
    %c8_i32 = arith.constant 8 : i32
    %0 = arith.muli %arg0, %c8_i32 : i32
    %c0_i32 = arith.constant 0 : i32
    %1 = arith.addi %0, %c0_i32 : i32
    %2 = arith.index_cast %1 : i32 to index
    %3 = memref.load %arg1[%2] : memref<16xi32, #tpu.memory_space<smem>>
    %c0_i32_0 = arith.constant 0 : i32
    %4 = tpu.memref_slice %arg6[%3, %c0_i32_0] : memref<100x32xf32, #tpu.memory_space<any>> -> memref<1x32xf32, #tpu.memory_space<any>>
    %c0_i32_1 = arith.constant 0 : i32
    %5 = tpu.memref_slice %arg9[%c0_i32, %c0_i32_1] : memref<8x32xf32, #tpu.memory_space<vmem>> -> memref<1x32xf32, #tpu.memory_space<vmem>>
    %6 = tpu.memref_slice %arg11[%c0_i32] : memref<8x!tpu.dma_semaphore, #tpu.memory_space<semaphore_mem>> -> memref<1x!tpu.dma_semaphore, #tpu.memory_space<semaphore_mem>>
    %7 = tpu.memref_squeeze %6 : memref<1x!tpu.dma_semaphore, #tpu.memory_space<semaphore_mem>> -> memref<!tpu.dma_semaphore, #tpu.memory_space<semaphore_mem>>
    tpu.enqueue_dma source(%4 : memref<1x32xf32, #tpu.memory_space<any>>) target(%5 : memref<1x32xf32, #tpu.memory_space<vmem>>) target_semaphore(%7 : memref<!tpu.dma_semaphore, #tpu.memory_space<semaphore_mem>>)
    %8 = arith.addi %0, %c0_i32 : i32
    %9 = arith.index_cast %8 : i32 to index
    %10 = memref.load %arg2[%9] : memref<16xi32, #tpu.memory_space<smem>>
    %c0_i32_2 = arith.constant 0 : i32
    %11 = tpu.memref_slice %arg7[%10, %c0_i32_2] : memref<2x32xf32, #tpu.memory_space<any>> -> memref<1x32xf32, #tpu.memory_space<any>>
    %c0_i32_3 = arith.constant 0 : i32
    %12 = tpu.memref_slice %arg10[%c0_i32, %c0_i32_3] : memref<8x32xf32, #tpu.memory_space<vmem>> -> memref<1x32xf32, #tpu.memory_space<vmem>>
    %13 = tpu.memref_slice %arg12[%c0_i32] : memref<8x!tpu.dma_semaphore, #tpu.memory_space<semaphore_mem>> -> memref<1x!tpu.dma_semaphore, #tpu.memory_space<semaphore_mem>>
    %14 = tpu.memref_squeeze %13 : memref<1x!tpu.dma_semaphore, #tpu.memory_space<semaphore_mem>> -> memref<!tpu.dma_semaphore, #tpu.memory_space<semaphore_mem>>
    tpu.enqueue_dma source(%11 : memref<1x32xf32, #tpu.memory_space<any>>) target(%12 : memref<1x32xf32, #tpu.memory_space<vmem>>) target_semaphore(%14 : memref<!tpu.dma_semaphore, #tpu.memory_space<semaphore_mem>>)
    %c1_i32 = arith.constant 1 : i32
    %15 = arith.addi %0, %c1_i32 : i32
    %16 = arith.index_cast %15 : i32 to index
    %17 = memref.load %arg1[%16] : memref<16xi32, #tpu.memory_space<smem>>
    %c0_i32_4 = arith.constant 0 : i32
    %18 = tpu.memref_slice %arg6[%17, %c0_i32_4] : memref<100x32xf32, #tpu.memory_space<any>> -> memref<1x32xf32, #tpu.memory_space<any>>
    %c0_i32_5 = arith.constant 0 : i32
    %19 = tpu.memref_slice %arg9[%c1_i32, %c0_i32_5] : memref<8x32xf32, #tpu.memory_space<vmem>> -> memref<1x32xf32, #tpu.memory_space<vmem>>
    %20 = tpu.memref_slice %arg11[%c1_i32] : memref<8x!tpu.dma_semaphore, #tpu.memory_space<semaphore_mem>> -> memref<1x!tpu.dma_semaphore, #tpu.memory_space<semaphore_mem>>
    %21 = tpu.memref_squeeze %20 : memref<1x!tpu.dma_semaphore, #tpu.memory_space<semaphore_mem>> -> memref<!tpu.dma_semaphore, #tpu.memory_space<semaphore_mem>>
    tpu.enqueue_dma source(%18 : memref<1x32xf32, #tpu.memory_space<any>>) target(%19 : memref<1x32xf32, #tpu.memory_space<vmem>>) target_semaphore(%21 : memref<!tpu.dma_semaphore, #tpu.memory_space<semaphore_mem>>)
    %22 = arith.addi %0, %c1_i32 : i32
    %23 = arith.index_cast %22 : i32 to index
    %24 = memref.load %arg2[%23] : memref<16xi32, #tpu.memory_space<smem>>
    %c0_i32_6 = arith.constant 0 : i32
    %25 = tpu.memref_slice %arg7[%24, %c0_i32_6] : memref<2x32xf32, #tpu.memory_space<any>> -> memref<1x32xf32, #tpu.memory_space<any>>
    %c0_i32_7 = arith.constant 0 : i32
    %26 = tpu.memref_slice %arg10[%c1_i32, %c0_i32_7] : memref<8x32xf32, #tpu.memory_space<vmem>> -> memref<1x32xf32, #tpu.memory_space<vmem>>
    %27 = tpu.memref_slice %arg12[%c1_i32] : memref<8x!tpu.dma_semaphore, #tpu.memory_space<semaphore_mem>> -> memref<1x!tpu.dma_semaphore, #tpu.memory_space<semaphore_mem>>
    %28 = tpu.memref_squeeze %27 : memref<1x!tpu.dma_semaphore, #tpu.memory_space<semaphore_mem>> -> memref<!tpu.dma_semaphore, #tpu.memory_space<semaphore_mem>>
    tpu.enqueue_dma source(%25 : memref<1x32xf32, #tpu.memory_space<any>>) target(%26 : memref<1x32xf32, #tpu.memory_space<vmem>>) target_semaphore(%28 : memref<!tpu.dma_semaphore, #tpu.memory_space<semaphore_mem>>)
    %c2_i32 = arith.constant 2 : i32
    %29 = arith.addi %0, %c2_i32 : i32
    %30 = arith.index_cast %29 : i32 to index
    %31 = memref.load %arg1[%30] : memref<16xi32, #tpu.memory_space<smem>>
    %c0_i32_8 = arith.constant 0 : i32
    %32 = tpu.memref_slice %arg6[%31, %c0_i32_8] : memref<100x32xf32, #tpu.memory_space<any>> -> memref<1x32xf32, #tpu.memory_space<any>>
    %c0_i32_9 = arith.constant 0 : i32
    %33 = tpu.memref_slice %arg9[%c2_i32, %c0_i32_9] : memref<8x32xf32, #tpu.memory_space<vmem>> -> memref<1x32xf32, #tpu.memory_space<vmem>>
    %34 = tpu.memref_slice %arg11[%c2_i32] : memref<8x!tpu.dma_semaphore, #tpu.memory_space<semaphore_mem>> -> memref<1x!tpu.dma_semaphore, #tpu.memory_space<semaphore_mem>>
    %35 = tpu.memref_squeeze %34 : memref<1x!tpu.dma_semaphore, #tpu.memory_space<semaphore_mem>> -> memref<!tpu.dma_semaphore, #tpu.memory_space<semaphore_mem>>
    tpu.enqueue_dma source(%32 : memref<1x32xf32, #tpu.memory_space<any>>) target(%33 : memref<1x32xf32, #tpu.memory_space<vmem>>) target_semaphore(%35 : memref<!tpu.dma_semaphore, #tpu.memory_space<semaphore_mem>>)
    %36 = arith.addi %0, %c2_i32 : i32
    %37 = arith.index_cast %36 : i32 to index
    %38 = memref.load %arg2[%37] : memref<16xi32, #tpu.memory_space<smem>>
    %c0_i32_10 = arith.constant 0 : i32
    %39 = tpu.memref_slice %arg7[%38, %c0_i32_10] : memref<2x32xf32, #tpu.memory_space<any>> -> memref<1x32xf32, #tpu.memory_space<any>>
    %c0_i32_11 = arith.constant 0 : i32
    %40 = tpu.memref_slice %arg10[%c2_i32, %c0_i32_11] : memref<8x32xf32, #tpu.memory_space<vmem>> -> memref<1x32xf32, #tpu.memory_space<vmem>>
    %41 = tpu.memref_slice %arg12[%c2_i32] : memref<8x!tpu.dma_semaphore, #tpu.memory_space<semaphore_mem>> -> memref<1x!tpu.dma_semaphore, #tpu.memory_space<semaphore_mem>>
    %42 = tpu.memref_squeeze %41 : memref<1x!tpu.dma_semaphore, #tpu.memory_space<semaphore_mem>> -> memref<!tpu.dma_semaphore, #tpu.memory_space<semaphore_mem>>
    tpu.enqueue_dma source(%39 : memref<1x32xf32, #tpu.memory_space<any>>) target(%40 : memref<1x32xf32, #tpu.memory_space<vmem>>) target_semaphore(%42 : memref<!tpu.dma_semaphore, #tpu.memory_space<semaphore_mem>>)
    %c3_i32 = arith.constant 3 : i32
    %43 = arith.addi %0, %c3_i32 : i32
    %44 = arith.index_cast %43 : i32 to index
    %45 = memref.load %arg1[%44] : memref<16xi32, #tpu.memory_space<smem>>
    %c0_i32_12 = arith.constant 0 : i32
    %46 = tpu.memref_slice %arg6[%45, %c0_i32_12] : memref<100x32xf32, #tpu.memory_space<any>> -> memref<1x32xf32, #tpu.memory_space<any>>
    %c0_i32_13 = arith.constant 0 : i32
    %47 = tpu.memref_slice %arg9[%c3_i32, %c0_i32_13] : memref<8x32xf32, #tpu.memory_space<vmem>> -> memref<1x32xf32, #tpu.memory_space<vmem>>
    %48 = tpu.memref_slice %arg11[%c3_i32] : memref<8x!tpu.dma_semaphore, #tpu.memory_space<semaphore_mem>> -> memref<1x!tpu.dma_semaphore, #tpu.memory_space<semaphore_mem>>
    %49 = tpu.memref_squeeze %48 : memref<1x!tpu.dma_semaphore, #tpu.memory_space<semaphore_mem>> -> memref<!tpu.dma_semaphore, #tpu.memory_space<semaphore_mem>>
    tpu.enqueue_dma source(%46 : memref<1x32xf32, #tpu.memory_space<any>>) target(%47 : memref<1x32xf32, #tpu.memory_space<vmem>>) target_semaphore(%49 : memref<!tpu.dma_semaphore, #tpu.memory_space<semaphore_mem>>)
    %50 = arith.addi %0, %c3_i32 : i32
    %51 = arith.index_cast %50 : i32 to index
    %52 = memref.load %arg2[%51] : memref<16xi32, #tpu.memory_space<smem>>
    %c0_i32_14 = arith.constant 0 : i32
    %53 = tpu.memref_slice %arg7[%52, %c0_i32_14] : memref<2x32xf32, #tpu.memory_space<any>> -> memref<1x32xf32, #tpu.memory_space<any>>
    %c0_i32_15 = arith.constant 0 : i32
    %54 = tpu.memref_slice %arg10[%c3_i32, %c0_i32_15] : memref<8x32xf32, #tpu.memory_space<vmem>> -> memref<1x32xf32, #tpu.memory_space<vmem>>
    %55 = tpu.memref_slice %arg12[%c3_i32] : memref<8x!tpu.dma_semaphore, #tpu.memory_space<semaphore_mem>> -> memref<1x!tpu.dma_semaphore, #tpu.memory_space<semaphore_mem>>
    %56 = tpu.memref_squeeze %55 : memref<1x!tpu.dma_semaphore, #tpu.memory_space<semaphore_mem>> -> memref<!tpu.dma_semaphore, #tpu.memory_space<semaphore_mem>>
    tpu.enqueue_dma source(%53 : memref<1x32xf32, #tpu.memory_space<any>>) target(%54 : memref<1x32xf32, #tpu.memory_space<vmem>>) target_semaphore(%56 : memref<!tpu.dma_semaphore, #tpu.memory_space<semaphore_mem>>)
    %c4_i32 = arith.constant 4 : i32
    %57 = arith.addi %0, %c4_i32 : i32
    %58 = arith.index_cast %57 : i32 to index
    %59 = memref.load %arg1[%58] : memref<16xi32, #tpu.memory_space<smem>>
    %c0_i32_16 = arith.constant 0 : i32
    %60 = tpu.memref_slice %arg6[%59, %c0_i32_16] : memref<100x32xf32, #tpu.memory_space<any>> -> memref<1x32xf32, #tpu.memory_space<any>>
    %c0_i32_17 = arith.constant 0 : i32
    %61 = tpu.memref_slice %arg9[%c4_i32, %c0_i32_17] : memref<8x32xf32, #tpu.memory_space<vmem>> -> memref<1x32xf32, #tpu.memory_space<vmem>>
    %62 = tpu.memref_slice %arg11[%c4_i32] : memref<8x!tpu.dma_semaphore, #tpu.memory_space<semaphore_mem>> -> memref<1x!tpu.dma_semaphore, #tpu.memory_space<semaphore_mem>>
    %63 = tpu.memref_squeeze %62 : memref<1x!tpu.dma_semaphore, #tpu.memory_space<semaphore_mem>> -> memref<!tpu.dma_semaphore, #tpu.memory_space<semaphore_mem>>
    tpu.enqueue_dma source(%60 : memref<1x32xf32, #tpu.memory_space<any>>) target(%61 : memref<1x32xf32, #tpu.memory_space<vmem>>) target_semaphore(%63 : memref<!tpu.dma_semaphore, #tpu.memory_space<semaphore_mem>>)
    %64 = arith.addi %0, %c4_i32 : i32
    %65 = arith.index_cast %64 : i32 to index
    %66 = memref.load %arg2[%65] : memref<16xi32, #tpu.memory_space<smem>>
    %c0_i32_18 = arith.constant 0 : i32
    %67 = tpu.memref_slice %arg7[%66, %c0_i32_18] : memref<2x32xf32, #tpu.memory_space<any>> -> memref<1x32xf32, #tpu.memory_space<any>>
    %c0_i32_19 = arith.constant 0 : i32
    %68 = tpu.memref_slice %arg10[%c4_i32, %c0_i32_19] : memref<8x32xf32, #tpu.memory_space<vmem>> -> memref<1x32xf32, #tpu.memory_space<vmem>>
    %69 = tpu.memref_slice %arg12[%c4_i32] : memref<8x!tpu.dma_semaphore, #tpu.memory_space<semaphore_mem>> -> memref<1x!tpu.dma_semaphore, #tpu.memory_space<semaphore_mem>>
    %70 = tpu.memref_squeeze %69 : memref<1x!tpu.dma_semaphore, #tpu.memory_space<semaphore_mem>> -> memref<!tpu.dma_semaphore, #tpu.memory_space<semaphore_mem>>
    tpu.enqueue_dma source(%67 : memref<1x32xf32, #tpu.memory_space<any>>) target(%68 : memref<1x32xf32, #tpu.memory_space<vmem>>) target_semaphore(%70 : memref<!tpu.dma_semaphore, #tpu.memory_space<semaphore_mem>>)
    %c5_i32 = arith.constant 5 : i32
    %71 = arith.addi %0, %c5_i32 : i32
    %72 = arith.index_cast %71 : i32 to index
    %73 = memref.load %arg1[%72] : memref<16xi32, #tpu.memory_space<smem>>
    %c0_i32_20 = arith.constant 0 : i32
    %74 = tpu.memref_slice %arg6[%73, %c0_i32_20] : memref<100x32xf32, #tpu.memory_space<any>> -> memref<1x32xf32, #tpu.memory_space<any>>
    %c0_i32_21 = arith.constant 0 : i32
    %75 = tpu.memref_slice %arg9[%c5_i32, %c0_i32_21] : memref<8x32xf32, #tpu.memory_space<vmem>> -> memref<1x32xf32, #tpu.memory_space<vmem>>
    %76 = tpu.memref_slice %arg11[%c5_i32] : memref<8x!tpu.dma_semaphore, #tpu.memory_space<semaphore_mem>> -> memref<1x!tpu.dma_semaphore, #tpu.memory_space<semaphore_mem>>
    %77 = tpu.memref_squeeze %76 : memref<1x!tpu.dma_semaphore, #tpu.memory_space<semaphore_mem>> -> memref<!tpu.dma_semaphore, #tpu.memory_space<semaphore_mem>>
    tpu.enqueue_dma source(%74 : memref<1x32xf32, #tpu.memory_space<any>>) target(%75 : memref<1x32xf32, #tpu.memory_space<vmem>>) target_semaphore(%77 : memref<!tpu.dma_semaphore, #tpu.memory_space<semaphore_mem>>)
    %78 = arith.addi %0, %c5_i32 : i32
    %79 = arith.index_cast %78 : i32 to index
    %80 = memref.load %arg2[%79] : memref<16xi32, #tpu.memory_space<smem>>
    %c0_i32_22 = arith.constant 0 : i32
    %81 = tpu.memref_slice %arg7[%80, %c0_i32_22] : memref<2x32xf32, #tpu.memory_space<any>> -> memref<1x32xf32, #tpu.memory_space<any>>
    %c0_i32_23 = arith.constant 0 : i32
    %82 = tpu.memref_slice %arg10[%c5_i32, %c0_i32_23] : memref<8x32xf32, #tpu.memory_space<vmem>> -> memref<1x32xf32, #tpu.memory_space<vmem>>
    %83 = tpu.memref_slice %arg12[%c5_i32] : memref<8x!tpu.dma_semaphore, #tpu.memory_space<semaphore_mem>> -> memref<1x!tpu.dma_semaphore, #tpu.memory_space<semaphore_mem>>
    %84 = tpu.memref_squeeze %83 : memref<1x!tpu.dma_semaphore, #tpu.memory_space<semaphore_mem>> -> memref<!tpu.dma_semaphore, #tpu.memory_space<semaphore_mem>>
    tpu.enqueue_dma source(%81 : memref<1x32xf32, #tpu.memory_space<any>>) target(%82 : memref<1x32xf32, #tpu.memory_space<vmem>>) target_semaphore(%84 : memref<!tpu.dma_semaphore, #tpu.memory_space<semaphore_mem>>)
    %c6_i32 = arith.constant 6 : i32
    %85 = arith.addi %0, %c6_i32 : i32
    %86 = arith.index_cast %85 : i32 to index
    %87 = memref.load %arg1[%86] : memref<16xi32, #tpu.memory_space<smem>>
    %c0_i32_24 = arith.constant 0 : i32
    %88 = tpu.memref_slice %arg6[%87, %c0_i32_24] : memref<100x32xf32, #tpu.memory_space<any>> -> memref<1x32xf32, #tpu.memory_space<any>>
    %c0_i32_25 = arith.constant 0 : i32
    %89 = tpu.memref_slice %arg9[%c6_i32, %c0_i32_25] : memref<8x32xf32, #tpu.memory_space<vmem>> -> memref<1x32xf32, #tpu.memory_space<vmem>>
    %90 = tpu.memref_slice %arg11[%c6_i32] : memref<8x!tpu.dma_semaphore, #tpu.memory_space<semaphore_mem>> -> memref<1x!tpu.dma_semaphore, #tpu.memory_space<semaphore_mem>>
    %91 = tpu.memref_squeeze %90 : memref<1x!tpu.dma_semaphore, #tpu.memory_space<semaphore_mem>> -> memref<!tpu.dma_semaphore, #tpu.memory_space<semaphore_mem>>
    tpu.enqueue_dma source(%88 : memref<1x32xf32, #tpu.memory_space<any>>) target(%89 : memref<1x32xf32, #tpu.memory_space<vmem>>) target_semaphore(%91 : memref<!tpu.dma_semaphore, #tpu.memory_space<semaphore_mem>>)
    %92 = arith.addi %0, %c6_i32 : i32
    %93 = arith.index_cast %92 : i32 to index
    %94 = memref.load %arg2[%93] : memref<16xi32, #tpu.memory_space<smem>>
    %c0_i32_26 = arith.constant 0 : i32
    %95 = tpu.memref_slice %arg7[%94, %c0_i32_26] : memref<2x32xf32, #tpu.memory_space<any>> -> memref<1x32xf32, #tpu.memory_space<any>>
    %c0_i32_27 = arith.constant 0 : i32
    %96 = tpu.memref_slice %arg10[%c6_i32, %c0_i32_27] : memref<8x32xf32, #tpu.memory_space<vmem>> -> memref<1x32xf32, #tpu.memory_space<vmem>>
    %97 = tpu.memref_slice %arg12[%c6_i32] : memref<8x!tpu.dma_semaphore, #tpu.memory_space<semaphore_mem>> -> memref<1x!tpu.dma_semaphore, #tpu.memory_space<semaphore_mem>>
    %98 = tpu.memref_squeeze %97 : memref<1x!tpu.dma_semaphore, #tpu.memory_space<semaphore_mem>> -> memref<!tpu.dma_semaphore, #tpu.memory_space<semaphore_mem>>
    tpu.enqueue_dma source(%95 : memref<1x32xf32, #tpu.memory_space<any>>) target(%96 : memref<1x32xf32, #tpu.memory_space<vmem>>) target_semaphore(%98 : memref<!tpu.dma_semaphore, #tpu.memory_space<semaphore_mem>>)
    %c7_i32 = arith.constant 7 : i32
    %99 = arith.addi %0, %c7_i32 : i32
    %100 = arith.index_cast %99 : i32 to index
    %101 = memref.load %arg1[%100] : memref<16xi32, #tpu.memory_space<smem>>
    %c0_i32_28 = arith.constant 0 : i32
    %102 = tpu.memref_slice %arg6[%101, %c0_i32_28] : memref<100x32xf32, #tpu.memory_space<any>> -> memref<1x32xf32, #tpu.memory_space<any>>
    %c0_i32_29 = arith.constant 0 : i32
    %103 = tpu.memref_slice %arg9[%c7_i32, %c0_i32_29] : memref<8x32xf32, #tpu.memory_space<vmem>> -> memref<1x32xf32, #tpu.memory_space<vmem>>
    %104 = tpu.memref_slice %arg11[%c7_i32] : memref<8x!tpu.dma_semaphore, #tpu.memory_space<semaphore_mem>> -> memref<1x!tpu.dma_semaphore, #tpu.memory_space<semaphore_mem>>
    %105 = tpu.memref_squeeze %104 : memref<1x!tpu.dma_semaphore, #tpu.memory_space<semaphore_mem>> -> memref<!tpu.dma_semaphore, #tpu.memory_space<semaphore_mem>>
    tpu.enqueue_dma source(%102 : memref<1x32xf32, #tpu.memory_space<any>>) target(%103 : memref<1x32xf32, #tpu.memory_space<vmem>>) target_semaphore(%105 : memref<!tpu.dma_semaphore, #tpu.memory_space<semaphore_mem>>)
    %106 = arith.addi %0, %c7_i32 : i32
    %107 = arith.index_cast %106 : i32 to index
    %108 = memref.load %arg2[%107] : memref<16xi32, #tpu.memory_space<smem>>
    %c0_i32_30 = arith.constant 0 : i32
    %109 = tpu.memref_slice %arg7[%108, %c0_i32_30] : memref<2x32xf32, #tpu.memory_space<any>> -> memref<1x32xf32, #tpu.memory_space<any>>
    %c0_i32_31 = arith.constant 0 : i32
    %110 = tpu.memref_slice %arg10[%c7_i32, %c0_i32_31] : memref<8x32xf32, #tpu.memory_space<vmem>> -> memref<1x32xf32, #tpu.memory_space<vmem>>
    %111 = tpu.memref_slice %arg12[%c7_i32] : memref<8x!tpu.dma_semaphore, #tpu.memory_space<semaphore_mem>> -> memref<1x!tpu.dma_semaphore, #tpu.memory_space<semaphore_mem>>
    %112 = tpu.memref_squeeze %111 : memref<1x!tpu.dma_semaphore, #tpu.memory_space<semaphore_mem>> -> memref<!tpu.dma_semaphore, #tpu.memory_space<semaphore_mem>>
    tpu.enqueue_dma source(%109 : memref<1x32xf32, #tpu.memory_space<any>>) target(%110 : memref<1x32xf32, #tpu.memory_space<vmem>>) target_semaphore(%112 : memref<!tpu.dma_semaphore, #tpu.memory_space<semaphore_mem>>)
    %c8_i32_32 = arith.constant 8 : i32
    %c0_i32_33 = arith.constant 0 : i32
    %113 = arith.addi %0, %c0_i32_33 : i32
    %114 = arith.index_cast %113 : i32 to index
    %115 = memref.load %arg1[%114] : memref<16xi32, #tpu.memory_space<smem>>
    %c0_i32_34 = arith.constant 0 : i32
    %116 = tpu.memref_slice %arg6[%115, %c0_i32_34] : memref<100x32xf32, #tpu.memory_space<any>> -> memref<1x32xf32, #tpu.memory_space<any>>
    %c0_i32_35 = arith.constant 0 : i32
    %117 = tpu.memref_slice %arg9[%c0_i32_33, %c0_i32_35] : memref<8x32xf32, #tpu.memory_space<vmem>> -> memref<1x32xf32, #tpu.memory_space<vmem>>
    %118 = tpu.memref_slice %arg11[%c0_i32_33] : memref<8x!tpu.dma_semaphore, #tpu.memory_space<semaphore_mem>> -> memref<1x!tpu.dma_semaphore, #tpu.memory_space<semaphore_mem>>
    %119 = tpu.memref_squeeze %118 : memref<1x!tpu.dma_semaphore, #tpu.memory_space<semaphore_mem>> -> memref<!tpu.dma_semaphore, #tpu.memory_space<semaphore_mem>>
    tpu.wait_dma2 semaphore(%119 : memref<!tpu.dma_semaphore, #tpu.memory_space<semaphore_mem>>) src(%116 : memref<1x32xf32, #tpu.memory_space<any>>) dst(%117 : memref<1x32xf32, #tpu.memory_space<vmem>>)
    %120 = arith.addi %0, %c0_i32_33 : i32
    %121 = arith.index_cast %120 : i32 to index
    %122 = memref.load %arg2[%121] : memref<16xi32, #tpu.memory_space<smem>>
    %c0_i32_36 = arith.constant 0 : i32
    %123 = tpu.memref_slice %arg7[%122, %c0_i32_36] : memref<2x32xf32, #tpu.memory_space<any>> -> memref<1x32xf32, #tpu.memory_space<any>>
    %c0_i32_37 = arith.constant 0 : i32
    %124 = tpu.memref_slice %arg10[%c0_i32_33, %c0_i32_37] : memref<8x32xf32, #tpu.memory_space<vmem>> -> memref<1x32xf32, #tpu.memory_space<vmem>>
    %125 = tpu.memref_slice %arg12[%c0_i32_33] : memref<8x!tpu.dma_semaphore, #tpu.memory_space<semaphore_mem>> -> memref<1x!tpu.dma_semaphore, #tpu.memory_space<semaphore_mem>>
    %126 = tpu.memref_squeeze %125 : memref<1x!tpu.dma_semaphore, #tpu.memory_space<semaphore_mem>> -> memref<!tpu.dma_semaphore, #tpu.memory_space<semaphore_mem>>
    tpu.wait_dma2 semaphore(%126 : memref<!tpu.dma_semaphore, #tpu.memory_space<semaphore_mem>>) src(%123 : memref<1x32xf32, #tpu.memory_space<any>>) dst(%124 : memref<1x32xf32, #tpu.memory_space<vmem>>)
    %c1_i32_38 = arith.constant 1 : i32
    %127 = arith.addi %0, %c1_i32_38 : i32
    %128 = arith.index_cast %127 : i32 to index
    %129 = memref.load %arg1[%128] : memref<16xi32, #tpu.memory_space<smem>>
    %c0_i32_39 = arith.constant 0 : i32
    %130 = tpu.memref_slice %arg6[%129, %c0_i32_39] : memref<100x32xf32, #tpu.memory_space<any>> -> memref<1x32xf32, #tpu.memory_space<any>>
    %c0_i32_40 = arith.constant 0 : i32
    %131 = tpu.memref_slice %arg9[%c1_i32_38, %c0_i32_40] : memref<8x32xf32, #tpu.memory_space<vmem>> -> memref<1x32xf32, #tpu.memory_space<vmem>>
    %132 = tpu.memref_slice %arg11[%c1_i32_38] : memref<8x!tpu.dma_semaphore, #tpu.memory_space<semaphore_mem>> -> memref<1x!tpu.dma_semaphore, #tpu.memory_space<semaphore_mem>>
    %133 = tpu.memref_squeeze %132 : memref<1x!tpu.dma_semaphore, #tpu.memory_space<semaphore_mem>> -> memref<!tpu.dma_semaphore, #tpu.memory_space<semaphore_mem>>
    tpu.wait_dma2 semaphore(%133 : memref<!tpu.dma_semaphore, #tpu.memory_space<semaphore_mem>>) src(%130 : memref<1x32xf32, #tpu.memory_space<any>>) dst(%131 : memref<1x32xf32, #tpu.memory_space<vmem>>)
    %134 = arith.addi %0, %c1_i32_38 : i32
    %135 = arith.index_cast %134 : i32 to index
    %136 = memref.load %arg2[%135] : memref<16xi32, #tpu.memory_space<smem>>
    %c0_i32_41 = arith.constant 0 : i32
    %137 = tpu.memref_slice %arg7[%136, %c0_i32_41] : memref<2x32xf32, #tpu.memory_space<any>> -> memref<1x32xf32, #tpu.memory_space<any>>
    %c0_i32_42 = arith.constant 0 : i32
    %138 = tpu.memref_slice %arg10[%c1_i32_38, %c0_i32_42] : memref<8x32xf32, #tpu.memory_space<vmem>> -> memref<1x32xf32, #tpu.memory_space<vmem>>
    %139 = tpu.memref_slice %arg12[%c1_i32_38] : memref<8x!tpu.dma_semaphore, #tpu.memory_space<semaphore_mem>> -> memref<1x!tpu.dma_semaphore, #tpu.memory_space<semaphore_mem>>
    %140 = tpu.memref_squeeze %139 : memref<1x!tpu.dma_semaphore, #tpu.memory_space<semaphore_mem>> -> memref<!tpu.dma_semaphore, #tpu.memory_space<semaphore_mem>>
    tpu.wait_dma2 semaphore(%140 : memref<!tpu.dma_semaphore, #tpu.memory_space<semaphore_mem>>) src(%137 : memref<1x32xf32, #tpu.memory_space<any>>) dst(%138 : memref<1x32xf32, #tpu.memory_space<vmem>>)
    %c2_i32_43 = arith.constant 2 : i32
    %141 = arith.addi %0, %c2_i32_43 : i32
    %142 = arith.index_cast %141 : i32 to index
    %143 = memref.load %arg1[%142] : memref<16xi32, #tpu.memory_space<smem>>
    %c0_i32_44 = arith.constant 0 : i32
    %144 = tpu.memref_slice %arg6[%143, %c0_i32_44] : memref<100x32xf32, #tpu.memory_space<any>> -> memref<1x32xf32, #tpu.memory_space<any>>
    %c0_i32_45 = arith.constant 0 : i32
    %145 = tpu.memref_slice %arg9[%c2_i32_43, %c0_i32_45] : memref<8x32xf32, #tpu.memory_space<vmem>> -> memref<1x32xf32, #tpu.memory_space<vmem>>
    %146 = tpu.memref_slice %arg11[%c2_i32_43] : memref<8x!tpu.dma_semaphore, #tpu.memory_space<semaphore_mem>> -> memref<1x!tpu.dma_semaphore, #tpu.memory_space<semaphore_mem>>
    %147 = tpu.memref_squeeze %146 : memref<1x!tpu.dma_semaphore, #tpu.memory_space<semaphore_mem>> -> memref<!tpu.dma_semaphore, #tpu.memory_space<semaphore_mem>>
    tpu.wait_dma2 semaphore(%147 : memref<!tpu.dma_semaphore, #tpu.memory_space<semaphore_mem>>) src(%144 : memref<1x32xf32, #tpu.memory_space<any>>) dst(%145 : memref<1x32xf32, #tpu.memory_space<vmem>>)
    %148 = arith.addi %0, %c2_i32_43 : i32
    %149 = arith.index_cast %148 : i32 to index
    %150 = memref.load %arg2[%149] : memref<16xi32, #tpu.memory_space<smem>>
    %c0_i32_46 = arith.constant 0 : i32
    %151 = tpu.memref_slice %arg7[%150, %c0_i32_46] : memref<2x32xf32, #tpu.memory_space<any>> -> memref<1x32xf32, #tpu.memory_space<any>>
    %c0_i32_47 = arith.constant 0 : i32
    %152 = tpu.memref_slice %arg10[%c2_i32_43, %c0_i32_47] : memref<8x32xf32, #tpu.memory_space<vmem>> -> memref<1x32xf32, #tpu.memory_space<vmem>>
    %153 = tpu.memref_slice %arg12[%c2_i32_43] : memref<8x!tpu.dma_semaphore, #tpu.memory_space<semaphore_mem>> -> memref<1x!tpu.dma_semaphore, #tpu.memory_space<semaphore_mem>>
    %154 = tpu.memref_squeeze %153 : memref<1x!tpu.dma_semaphore, #tpu.memory_space<semaphore_mem>> -> memref<!tpu.dma_semaphore, #tpu.memory_space<semaphore_mem>>
    tpu.wait_dma2 semaphore(%154 : memref<!tpu.dma_semaphore, #tpu.memory_space<semaphore_mem>>) src(%151 : memref<1x32xf32, #tpu.memory_space<any>>) dst(%152 : memref<1x32xf32, #tpu.memory_space<vmem>>)
    %c3_i32_48 = arith.constant 3 : i32
    %155 = arith.addi %0, %c3_i32_48 : i32
    %156 = arith.index_cast %155 : i32 to index
    %157 = memref.load %arg1[%156] : memref<16xi32, #tpu.memory_space<smem>>
    %c0_i32_49 = arith.constant 0 : i32
    %158 = tpu.memref_slice %arg6[%157, %c0_i32_49] : memref<100x32xf32, #tpu.memory_space<any>> -> memref<1x32xf32, #tpu.memory_space<any>>
    %c0_i32_50 = arith.constant 0 : i32
    %159 = tpu.memref_slice %arg9[%c3_i32_48, %c0_i32_50] : memref<8x32xf32, #tpu.memory_space<vmem>> -> memref<1x32xf32, #tpu.memory_space<vmem>>
    %160 = tpu.memref_slice %arg11[%c3_i32_48] : memref<8x!tpu.dma_semaphore, #tpu.memory_space<semaphore_mem>> -> memref<1x!tpu.dma_semaphore, #tpu.memory_space<semaphore_mem>>
    %161 = tpu.memref_squeeze %160 : memref<1x!tpu.dma_semaphore, #tpu.memory_space<semaphore_mem>> -> memref<!tpu.dma_semaphore, #tpu.memory_space<semaphore_mem>>
    tpu.wait_dma2 semaphore(%161 : memref<!tpu.dma_semaphore, #tpu.memory_space<semaphore_mem>>) src(%158 : memref<1x32xf32, #tpu.memory_space<any>>) dst(%159 : memref<1x32xf32, #tpu.memory_space<vmem>>)
    %162 = arith.addi %0, %c3_i32_48 : i32
    %163 = arith.index_cast %162 : i32 to index
    %164 = memref.load %arg2[%163] : memref<16xi32, #tpu.memory_space<smem>>
    %c0_i32_51 = arith.constant 0 : i32
    %165 = tpu.memref_slice %arg7[%164, %c0_i32_51] : memref<2x32xf32, #tpu.memory_space<any>> -> memref<1x32xf32, #tpu.memory_space<any>>
    %c0_i32_52 = arith.constant 0 : i32
    %166 = tpu.memref_slice %arg10[%c3_i32_48, %c0_i32_52] : memref<8x32xf32, #tpu.memory_space<vmem>> -> memref<1x32xf32, #tpu.memory_space<vmem>>
    %167 = tpu.memref_slice %arg12[%c3_i32_48] : memref<8x!tpu.dma_semaphore, #tpu.memory_space<semaphore_mem>> -> memref<1x!tpu.dma_semaphore, #tpu.memory_space<semaphore_mem>>
    %168 = tpu.memref_squeeze %167 : memref<1x!tpu.dma_semaphore, #tpu.memory_space<semaphore_mem>> -> memref<!tpu.dma_semaphore, #tpu.memory_space<semaphore_mem>>
    tpu.wait_dma2 semaphore(%168 : memref<!tpu.dma_semaphore, #tpu.memory_space<semaphore_mem>>) src(%165 : memref<1x32xf32, #tpu.memory_space<any>>) dst(%166 : memref<1x32xf32, #tpu.memory_space<vmem>>)
    %c4_i32_53 = arith.constant 4 : i32
    %169 = arith.addi %0, %c4_i32_53 : i32
    %170 = arith.index_cast %169 : i32 to index
    %171 = memref.load %arg1[%170] : memref<16xi32, #tpu.memory_space<smem>>
    %c0_i32_54 = arith.constant 0 : i32
    %172 = tpu.memref_slice %arg6[%171, %c0_i32_54] : memref<100x32xf32, #tpu.memory_space<any>> -> memref<1x32xf32, #tpu.memory_space<any>>
    %c0_i32_55 = arith.constant 0 : i32
    %173 = tpu.memref_slice %arg9[%c4_i32_53, %c0_i32_55] : memref<8x32xf32, #tpu.memory_space<vmem>> -> memref<1x32xf32, #tpu.memory_space<vmem>>
    %174 = tpu.memref_slice %arg11[%c4_i32_53] : memref<8x!tpu.dma_semaphore, #tpu.memory_space<semaphore_mem>> -> memref<1x!tpu.dma_semaphore, #tpu.memory_space<semaphore_mem>>
    %175 = tpu.memref_squeeze %174 : memref<1x!tpu.dma_semaphore, #tpu.memory_space<semaphore_mem>> -> memref<!tpu.dma_semaphore, #tpu.memory_space<semaphore_mem>>
    tpu.wait_dma2 semaphore(%175 : memref<!tpu.dma_semaphore, #tpu.memory_space<semaphore_mem>>) src(%172 : memref<1x32xf32, #tpu.memory_space<any>>) dst(%173 : memref<1x32xf32, #tpu.memory_space<vmem>>)
    %176 = arith.addi %0, %c4_i32_53 : i32
    %177 = arith.index_cast %176 : i32 to index
    %178 = memref.load %arg2[%177] : memref<16xi32, #tpu.memory_space<smem>>
    %c0_i32_56 = arith.constant 0 : i32
    %179 = tpu.memref_slice %arg7[%178, %c0_i32_56] : memref<2x32xf32, #tpu.memory_space<any>> -> memref<1x32xf32, #tpu.memory_space<any>>
    %c0_i32_57 = arith.constant 0 : i32
    %180 = tpu.memref_slice %arg10[%c4_i32_53, %c0_i32_57] : memref<8x32xf32, #tpu.memory_space<vmem>> -> memref<1x32xf32, #tpu.memory_space<vmem>>
    %181 = tpu.memref_slice %arg12[%c4_i32_53] : memref<8x!tpu.dma_semaphore, #tpu.memory_space<semaphore_mem>> -> memref<1x!tpu.dma_semaphore, #tpu.memory_space<semaphore_mem>>
    %182 = tpu.memref_squeeze %181 : memref<1x!tpu.dma_semaphore, #tpu.memory_space<semaphore_mem>> -> memref<!tpu.dma_semaphore, #tpu.memory_space<semaphore_mem>>
    tpu.wait_dma2 semaphore(%182 : memref<!tpu.dma_semaphore, #tpu.memory_space<semaphore_mem>>) src(%179 : memref<1x32xf32, #tpu.memory_space<any>>) dst(%180 : memref<1x32xf32, #tpu.memory_space<vmem>>)
    %c5_i32_58 = arith.constant 5 : i32
    %183 = arith.addi %0, %c5_i32_58 : i32
    %184 = arith.index_cast %183 : i32 to index
    %185 = memref.load %arg1[%184] : memref<16xi32, #tpu.memory_space<smem>>
    %c0_i32_59 = arith.constant 0 : i32
    %186 = tpu.memref_slice %arg6[%185, %c0_i32_59] : memref<100x32xf32, #tpu.memory_space<any>> -> memref<1x32xf32, #tpu.memory_space<any>>
    %c0_i32_60 = arith.constant 0 : i32
    %187 = tpu.memref_slice %arg9[%c5_i32_58, %c0_i32_60] : memref<8x32xf32, #tpu.memory_space<vmem>> -> memref<1x32xf32, #tpu.memory_space<vmem>>
    %188 = tpu.memref_slice %arg11[%c5_i32_58] : memref<8x!tpu.dma_semaphore, #tpu.memory_space<semaphore_mem>> -> memref<1x!tpu.dma_semaphore, #tpu.memory_space<semaphore_mem>>
    %189 = tpu.memref_squeeze %188 : memref<1x!tpu.dma_semaphore, #tpu.memory_space<semaphore_mem>> -> memref<!tpu.dma_semaphore, #tpu.memory_space<semaphore_mem>>
    tpu.wait_dma2 semaphore(%189 : memref<!tpu.dma_semaphore, #tpu.memory_space<semaphore_mem>>) src(%186 : memref<1x32xf32, #tpu.memory_space<any>>) dst(%187 : memref<1x32xf32, #tpu.memory_space<vmem>>)
    %190 = arith.addi %0, %c5_i32_58 : i32
    %191 = arith.index_cast %190 : i32 to index
    %192 = memref.load %arg2[%191] : memref<16xi32, #tpu.memory_space<smem>>
    %c0_i32_61 = arith.constant 0 : i32
    %193 = tpu.memref_slice %arg7[%192, %c0_i32_61] : memref<2x32xf32, #tpu.memory_space<any>> -> memref<1x32xf32, #tpu.memory_space<any>>
    %c0_i32_62 = arith.constant 0 : i32
    %194 = tpu.memref_slice %arg10[%c5_i32_58, %c0_i32_62] : memref<8x32xf32, #tpu.memory_space<vmem>> -> memref<1x32xf32, #tpu.memory_space<vmem>>
    %195 = tpu.memref_slice %arg12[%c5_i32_58] : memref<8x!tpu.dma_semaphore, #tpu.memory_space<semaphore_mem>> -> memref<1x!tpu.dma_semaphore, #tpu.memory_space<semaphore_mem>>
    %196 = tpu.memref_squeeze %195 : memref<1x!tpu.dma_semaphore, #tpu.memory_space<semaphore_mem>> -> memref<!tpu.dma_semaphore, #tpu.memory_space<semaphore_mem>>
    tpu.wait_dma2 semaphore(%196 : memref<!tpu.dma_semaphore, #tpu.memory_space<semaphore_mem>>) src(%193 : memref<1x32xf32, #tpu.memory_space<any>>) dst(%194 : memref<1x32xf32, #tpu.memory_space<vmem>>)
    %c6_i32_63 = arith.constant 6 : i32
    %197 = arith.addi %0, %c6_i32_63 : i32
    %198 = arith.index_cast %197 : i32 to index
    %199 = memref.load %arg1[%198] : memref<16xi32, #tpu.memory_space<smem>>
    %c0_i32_64 = arith.constant 0 : i32
    %200 = tpu.memref_slice %arg6[%199, %c0_i32_64] : memref<100x32xf32, #tpu.memory_space<any>> -> memref<1x32xf32, #tpu.memory_space<any>>
    %c0_i32_65 = arith.constant 0 : i32
    %201 = tpu.memref_slice %arg9[%c6_i32_63, %c0_i32_65] : memref<8x32xf32, #tpu.memory_space<vmem>> -> memref<1x32xf32, #tpu.memory_space<vmem>>
    %202 = tpu.memref_slice %arg11[%c6_i32_63] : memref<8x!tpu.dma_semaphore, #tpu.memory_space<semaphore_mem>> -> memref<1x!tpu.dma_semaphore, #tpu.memory_space<semaphore_mem>>
    %203 = tpu.memref_squeeze %202 : memref<1x!tpu.dma_semaphore, #tpu.memory_space<semaphore_mem>> -> memref<!tpu.dma_semaphore, #tpu.memory_space<semaphore_mem>>
    tpu.wait_dma2 semaphore(%203 : memref<!tpu.dma_semaphore, #tpu.memory_space<semaphore_mem>>) src(%200 : memref<1x32xf32, #tpu.memory_space<any>>) dst(%201 : memref<1x32xf32, #tpu.memory_space<vmem>>)
    %204 = arith.addi %0, %c6_i32_63 : i32
    %205 = arith.index_cast %204 : i32 to index
    %206 = memref.load %arg2[%205] : memref<16xi32, #tpu.memory_space<smem>>
    %c0_i32_66 = arith.constant 0 : i32
    %207 = tpu.memref_slice %arg7[%206, %c0_i32_66] : memref<2x32xf32, #tpu.memory_space<any>> -> memref<1x32xf32, #tpu.memory_space<any>>
    %c0_i32_67 = arith.constant 0 : i32
    %208 = tpu.memref_slice %arg10[%c6_i32_63, %c0_i32_67] : memref<8x32xf32, #tpu.memory_space<vmem>> -> memref<1x32xf32, #tpu.memory_space<vmem>>
    %209 = tpu.memref_slice %arg12[%c6_i32_63] : memref<8x!tpu.dma_semaphore, #tpu.memory_space<semaphore_mem>> -> memref<1x!tpu.dma_semaphore, #tpu.memory_space<semaphore_mem>>
    %210 = tpu.memref_squeeze %209 : memref<1x!tpu.dma_semaphore, #tpu.memory_space<semaphore_mem>> -> memref<!tpu.dma_semaphore, #tpu.memory_space<semaphore_mem>>
    tpu.wait_dma2 semaphore(%210 : memref<!tpu.dma_semaphore, #tpu.memory_space<semaphore_mem>>) src(%207 : memref<1x32xf32, #tpu.memory_space<any>>) dst(%208 : memref<1x32xf32, #tpu.memory_space<vmem>>)
    %c7_i32_68 = arith.constant 7 : i32
    %211 = arith.addi %0, %c7_i32_68 : i32
    %212 = arith.index_cast %211 : i32 to index
    %213 = memref.load %arg1[%212] : memref<16xi32, #tpu.memory_space<smem>>
    %c0_i32_69 = arith.constant 0 : i32
    %214 = tpu.memref_slice %arg6[%213, %c0_i32_69] : memref<100x32xf32, #tpu.memory_space<any>> -> memref<1x32xf32, #tpu.memory_space<any>>
    %c0_i32_70 = arith.constant 0 : i32
    %215 = tpu.memref_slice %arg9[%c7_i32_68, %c0_i32_70] : memref<8x32xf32, #tpu.memory_space<vmem>> -> memref<1x32xf32, #tpu.memory_space<vmem>>
    %216 = tpu.memref_slice %arg11[%c7_i32_68] : memref<8x!tpu.dma_semaphore, #tpu.memory_space<semaphore_mem>> -> memref<1x!tpu.dma_semaphore, #tpu.memory_space<semaphore_mem>>
    %217 = tpu.memref_squeeze %216 : memref<1x!tpu.dma_semaphore, #tpu.memory_space<semaphore_mem>> -> memref<!tpu.dma_semaphore, #tpu.memory_space<semaphore_mem>>
    tpu.wait_dma2 semaphore(%217 : memref<!tpu.dma_semaphore, #tpu.memory_space<semaphore_mem>>) src(%214 : memref<1x32xf32, #tpu.memory_space<any>>) dst(%215 : memref<1x32xf32, #tpu.memory_space<vmem>>)
    %218 = arith.addi %0, %c7_i32_68 : i32
    %219 = arith.index_cast %218 : i32 to index
    %220 = memref.load %arg2[%219] : memref<16xi32, #tpu.memory_space<smem>>
    %c0_i32_71 = arith.constant 0 : i32
    %221 = tpu.memref_slice %arg7[%220, %c0_i32_71] : memref<2x32xf32, #tpu.memory_space<any>> -> memref<1x32xf32, #tpu.memory_space<any>>
    %c0_i32_72 = arith.constant 0 : i32
    %222 = tpu.memref_slice %arg10[%c7_i32_68, %c0_i32_72] : memref<8x32xf32, #tpu.memory_space<vmem>> -> memref<1x32xf32, #tpu.memory_space<vmem>>
    %223 = tpu.memref_slice %arg12[%c7_i32_68] : memref<8x!tpu.dma_semaphore, #tpu.memory_space<semaphore_mem>> -> memref<1x!tpu.dma_semaphore, #tpu.memory_space<semaphore_mem>>
    %224 = tpu.memref_squeeze %223 : memref<1x!tpu.dma_semaphore, #tpu.memory_space<semaphore_mem>> -> memref<!tpu.dma_semaphore, #tpu.memory_space<semaphore_mem>>
    tpu.wait_dma2 semaphore(%224 : memref<!tpu.dma_semaphore, #tpu.memory_space<semaphore_mem>>) src(%221 : memref<1x32xf32, #tpu.memory_space<any>>) dst(%222 : memref<1x32xf32, #tpu.memory_space<vmem>>)
    %c8_i32_73 = arith.constant 8 : i32
    %c0 = arith.constant 0 : index
    %c0_74 = arith.constant 0 : index
    %225 = vector.load %arg9[%c0, %c0_74] : memref<8x32xf32, #tpu.memory_space<vmem>>, vector<8x32xf32>
    %c0_75 = arith.constant 0 : index
    %c0_76 = arith.constant 0 : index
    %226 = vector.load %arg10[%c0_75, %c0_76] : memref<8x32xf32, #tpu.memory_space<vmem>>, vector<8x32xf32>
    %227 = arith.addf %225, %226 : vector<8x32xf32>
    %c0_77 = arith.constant 0 : index
    %c0_78 = arith.constant 0 : index
    %228 = vector.load %arg3[%c0_77, %c0_78] : memref<8x32xf32, #tpu.memory_space<vmem>>, vector<8x32xf32>
    %229 = arith.addf %227, %228 : vector<8x32xf32>
    %c0_79 = arith.constant 0 : index
    %c0_80 = arith.constant 0 : index
    %230 = vector.load %arg4[%c0_79, %c0_80] : memref<1x32xf32, #tpu.memory_space<vmem>>, vector<1x32xf32>
    %c0_81 = arith.constant 0 : index
    %c0_82 = arith.constant 0 : index
    %231 = vector.load %arg5[%c0_81, %c0_82] : memref<1x32xf32, #tpu.memory_space<vmem>>, vector<1x32xf32>
    %cst = arith.constant dense<0.000000e+00> : vector<8xf32>
    %232 = vector.multi_reduction <add>, %229, %cst [1] : vector<8x32xf32> to vector<8xf32>
    %233 = vector.shape_cast %232 : vector<8xf32> to vector<8x1xf32>
    %cst_83 = arith.constant 3.200000e+01 : f32
    %234 = vector.broadcast %cst_83 : f32 to vector<8x1xf32>
    %235 = arith.divf %233, %234 : vector<8x1xf32>
    %236 = vector.broadcast %235 : vector<8x1xf32> to vector<8x32xf32>
    %237 = arith.subf %229, %236 : vector<8x32xf32>
    %238 = arith.mulf %237, %237 : vector<8x32xf32>
    %cst_84 = arith.constant dense<0.000000e+00> : vector<8xf32>
    %239 = vector.multi_reduction <add>, %238, %cst_84 [1] : vector<8x32xf32> to vector<8xf32>
    %240 = vector.shape_cast %239 : vector<8xf32> to vector<8x1xf32>
    %cst_85 = arith.constant 3.200000e+01 : f32
    %241 = vector.broadcast %cst_85 : f32 to vector<8x1xf32>
    %242 = arith.divf %240, %241 : vector<8x1xf32>
    %243 = vector.broadcast %235 : vector<8x1xf32> to vector<8x32xf32>
    %244 = arith.subf %229, %243 : vector<8x32xf32>
    %cst_86 = arith.constant 9.99999996E-13 : f32
    %245 = vector.broadcast %cst_86 : f32 to vector<8x1xf32>
    %246 = arith.addf %242, %245 : vector<8x1xf32>
    %247 = math.rsqrt %246 : vector<8x1xf32>
    %248 = vector.broadcast %247 : vector<8x1xf32> to vector<8x32xf32>
    %249 = arith.mulf %244, %248 : vector<8x32xf32>
    %250 = vector.broadcast %230 : vector<1x32xf32> to vector<8x32xf32>
    %251 = arith.mulf %249, %250 : vector<8x32xf32>
    %252 = vector.broadcast %231 : vector<1x32xf32> to vector<8x32xf32>
    %253 = arith.addf %251, %252 : vector<8x32xf32>
    %c0_87 = arith.constant 0 : index
    %c0_88 = arith.constant 0 : index
    %254 = vector.load %arg8[%c0_87, %c0_88] : memref<8x32xf32, #tpu.memory_space<vmem>>, vector<8x32xf32>
    tpu.vector_store %arg8[%c0_87, %c0_88], %253 {strides = array<i32>} : memref<8x32xf32, #tpu.memory_space<vmem>>, vector<8x32xf32>,
    return
  }
  func.func @transform_0(%arg0: i32, %arg1: memref<16xi32, #tpu.memory_space<smem>>, %arg2: memref<16xi32, #tpu.memory_space<smem>>) -> (i32, i32) {
    %c0_i32 = arith.constant 0 : i32
    %c0_i32_0 = arith.constant 0 : i32
    %c0_i32_1 = arith.constant 0 : i32
    return %c0_i32, %c0_i32_0 : i32, i32
  }
  func.func @transform_1(%arg0: i32, %arg1: memref<16xi32, #tpu.memory_space<smem>>, %arg2: memref<16xi32, #tpu.memory_space<smem>>) -> (i32, i32) {
    %c0_i32 = arith.constant 0 : i32
    %c0_i32_0 = arith.constant 0 : i32
    %c0_i32_1 = arith.constant 0 : i32
    return %c0_i32, %c0_i32_0 : i32, i32
  }
  func.func @transform_2(%arg0: i32, %arg1: memref<16xi32, #tpu.memory_space<smem>>, %arg2: memref<16xi32, #tpu.memory_space<smem>>) -> (i32, i32) {
    %c0_i32 = arith.constant 0 : i32
    %c0_i32_0 = arith.constant 0 : i32
    %c0_i32_1 = arith.constant 0 : i32
    return %c0_i32, %c0_i32_0 : i32, i32
  }
  func.func @transform_5(%arg0: i32, %arg1: memref<16xi32, #tpu.memory_space<smem>>, %arg2: memref<16xi32, #tpu.memory_space<smem>>) -> (i32, i32) {
    %c0_i32 = arith.constant 0 : i32
    %c0_i32_0 = arith.constant 0 : i32
    return %arg0, %c0_i32 : i32, i32
  }
}

</mosaic_0001>

<bundles_post_ra>
// kernel: tpu_custom_call.1
= control target key start
LH: loop header
LB: loop body
LE: loop exit
PB: predicated region body
PF: predicated region fallthrough
CT: control target
= control target key end

     0   :  { %s1321_s30 = smov [#allocation7]   ;;  %s1322_s8 = smov [#allocation8]   ;;  %s1529_s0 = inlined_call_operand.vmem [shape: s32[16], index: 0, kind: input, shape index: {}]   ;;  %s1530_s2 = inlined_call_operand.vmem [shape: f32[8,32], index: 2, kind: input, shape index: {}]   ;;  %s1531_s3 = inlined_call_operand.vmem [shape: f32[1,32], index: 3, kind: input, shape index: {}]   ;;  %s1532_s4 = inlined_call_operand.vmem [shape: f32[1,32], index: 4, kind: input, shape index: {}]   ;;  %s1533_s5 = inlined_call_operand.vmem [shape: f32[100,32], index: 5, kind: input, shape index: {}]   ;;  %s1534_s6 = inlined_call_operand.vmem [shape: f32[2,32], index: 6, kind: input, shape index: {}]   ;;  %s1535_s7 = inlined_call_operand.hbm [shape: f32[16,32], index: 7, kind: output, shape index: {}]   ;;  %s1536_s1 = inlined_call_operand.vmem [shape: s32[16], index: 1, kind: input, shape index: {}]  }
   0x1   :  { %s13_s26 = sshll.u32 %s1529_s0, 4  ;;  %s18_s29 = sshll.u32 %s1536_s1, 4  ;;  %s14_s26 = int_to_ptr.vmem [resolvable:$true] %s13_s26  ;;  %s19_s29 = int_to_ptr.vmem [resolvable:$true] %s18_s29 }
   0x2   :  { %16 = dma.vmem_to_smem %s14_s26, 16, %s1321_s30, [#allocation6] }
   0x3   :  { %21 = dma.vmem_to_smem %s19_s29, 16, %s1322_s8, [#allocation6] }
   0x4   :  { %1267 = dma.done.wait [#allocation6], 32 }
   0x5   :  { %1268 = vsyncadd [#allocation6], 4294967264 }
   0x6   :  { %24 = sfence }
   0x7   :  { %25 = vsyncpa [#allocation10], 0 }
   0x8   :  { %27 = vsyncpa [#allocation10 + $0x1], 0  ;;  %s1370_s9 = smov 0   ;;  %s1372_s10 = smov 0  }
   0x9   :  { %s1374_s0 = smov 0   ;;  %s1376_s11 = smov 0  }
   0xa LB: > { %s1125_s1 = sadd.s32 4294967295, %s1319_s11   ;;  %s1126_s12 = sadd.s32 4294967294, %s1319_s11   ;;  %s1319_s11 = sphi %s1376_s11, %s1544_s11   ;;  %s1315_s0 = sphi %s1374_s0, %s1543_s0   ;;  %s1311_s10 = sphi %s1372_s10, %s1542_s10   ;;  %s1307_s9 = sphi %s1370_s9, %s1541_s9  }
   0xb   : > { %s1393_s13 = sadd.s32 1, %s1319_s11   ;;  %s103_s14 = sadd.s32 1, %s1315_s0 }
   0xc   : > { %s100_s15 = ssub.s32 %s1319_s11, %s1393_s13  ;;  %p113_p0 = scmp.ne.s32.totalorder %s1315_s0, %s1311_s10 }
   0xd   : > { %p101_p1 = scmp.eq.s32.totalorder %s100_s15, 0  ;;  %p114_p2 = scmp.eq.s32.totalorder %s1125_s1, 1 }
   0xe   : > { %p119_p3 = scmp.ne.s32.totalorder %s1311_s10, %s1307_s9  ;;  %p120_p4 = scmp.eq.s32.totalorder %s1126_s12, 1 }
   0xf   : > { %s1403_s16 = scalar_select %p101_p1, %s1315_s0, %s103_s14  }
  0x10   : > { %p1405_p5 = por %p114_p2, %p113_p0  ;;  %p1409_p6 = por %p120_p4, %p119_p3 }
  0x11   : > { %p1128_p7 = scmp.ge.s32.totalorder %s1319_s11, 1  ;;  %p147_p8 = scmp.lt.s32.totalorder %s1319_s11, 3 }
  0x13   : > { %p148_p9 = pnand %p1128_p7, %p147_p8 }
  0x14   : > { %s1537_s19 = sand.u32 (!%p148_p9), 1, %s1311_s10   ;;  %s1416_s20 = sshll.u32 (!%p148_p9), %s1125_s1, 3 }
  0x15   : > { %151 = sbr.rel (%p148_p9) target bundleno = 481 (0x1e1), region = 32  ;;  %s1420_s21 = sshll.u32 (!%p148_p9), %s1537_s19, 3 }
  0x16   : > { %s167_s22 = sld [smem:[#allocation7 + %s1416_s20]] (!%p148_p9)  ;;  %s165_s26 = scalar_lea.vmem (!%p148_p9), [#allocation9], %s1420_s21 }
  0x1c   : > { %s168_s25 = scalar_lea.vmem %s1533_s5, %s167_s22 }
  0x1d   : > { %v183_v0 = vld [vmem:[%s168_s25] sm:$0x1] }
  0x1e   : > { %184 = vst [vmem:[#allocation2] sm:$0x1] %v183_v0 }
  0x1f   : > { %202 = vsyncadd [#allocation4], 16  ;;  %s203_s27 = sld [smem:[#allocation8 + %s1416_s20]] }
  0x25   : > { %s204_s30 = scalar_lea.vmem %s1534_s6, %s203_s27 }
  0x26   : > { %v219_v1 = vld [vmem:[%s204_s30] sm:$0x1] }
  0x27   : > { %220 = vst [vmem:[#allocation3] sm:$0x1] %v219_v1 }
  0x28   : > { %238 = vsyncadd [#allocation5], 16  ;;  %s239_s8 = sadd.s32 1, %s1416_s20 }
  0x29   : > { %s240_s1 = sld [smem:[#allocation7 + %s239_s8]] }
  0x2f   : > { %s241_s15 = scalar_lea.vmem %s1533_s5, %s240_s1 }
  0x30   : > { %v258_v2 = vld [vmem:[%s241_s15] sm:$0x1] }
  0x31   : > { %259 = vst [vmem:[#allocation2 + $0x1] sm:$0x1] %v258_v2 }
  0x32   : > { %277 = vsyncadd [#allocation4 + $0x1], 16  ;;  %s278_s22 = sld [smem:[#allocation8 + %s239_s8]] }
  0x38   : > { %s279_s25 = scalar_lea.vmem %s1534_s6, %s278_s22 }
  0x39   : > { %v296_v3 = vld [vmem:[%s279_s25] sm:$0x1] }
  0x3a   : > { %297 = vst [vmem:[#allocation3 + $0x1] sm:$0x1] %v296_v3 }
  0x3b   : > { %315 = vsyncadd [#allocation5 + $0x1], 16  ;;  %s316_s27 = sadd.s32 2, %s1416_s20 }
  0x3c   : > { %s317_s28 = sld [smem:[#allocation7 + %s316_s27]] }
  0x42   : > { %s318_s19 = scalar_lea.vmem %s1533_s5, %s317_s28 }
  0x43   : > { %v335_v4 = vld [vmem:[%s318_s19] sm:$0x1] }
  0x44   : > { %336 = vst [vmem:[#allocation2 + $0x2] sm:$0x1] %v335_v4 }
  0x45   : > { %354 = vsyncadd [#allocation4 + $0x2], 16  ;;  %s355_s1 = sld [smem:[#allocation8 + %s316_s27]] }
  0x4b   : > { %s356_s14 = scalar_lea.vmem %s1534_s6, %s355_s1 }
  0x4c   : > { %v373_v5 = vld [vmem:[%s356_s14] sm:$0x1] }
  0x4d   : > { %374 = vst [vmem:[#allocation3 + $0x2] sm:$0x1] %v373_v5 }
  0x4e   : > { %392 = vsyncadd [#allocation5 + $0x2], 16  ;;  %s393_s15 = sadd.s32 3, %s1416_s20 }
  0x4f   : > { %s394_s22 = sld [smem:[#allocation7 + %s393_s15]] }
  0x55   : > { %s395_s25 = scalar_lea.vmem %s1533_s5, %s394_s22 }
  0x56   : > { %v412_v6 = vld [vmem:[%s395_s25] sm:$0x1] }
  0x57   : > { %413 = vst [vmem:[#allocation2 + $0x3] sm:$0x1] %v412_v6 }
  0x58   : > { %431 = vsyncadd [#allocation4 + $0x3], 16  ;;  %s432_s19 = sld [smem:[#allocation8 + %s393_s15]] }
  0x5e   : > { %s433_s29 = scalar_lea.vmem %s1534_s6, %s432_s19 }
  0x5f   : > { %v450_v7 = vld [vmem:[%s433_s29] sm:$0x1] }
  0x60   : > { %451 = vst [vmem:[#allocation3 + $0x3] sm:$0x1] %v450_v7 }
  0x61   : > { %469 = vsyncadd [#allocation5 + $0x3], 16  ;;  %s470_s30 = sadd.s32 4, %s1416_s20 }
  0x62   : > { %s471_s1 = sld [smem:[#allocation7 + %s470_s30]] }
  0x68   : > { %s472_s14 = scalar_lea.vmem %s1533_s5, %s471_s1 }
  0x69   : > { %v489_v8 = vld [vmem:[%s472_s14] sm:$0x1] }
  0x6a   : > { %490 = vst [vmem:[#allocation2 + $0x4] sm:$0x1] %v489_v8 }
  0x6b   : > { %508 = vsyncadd [#allocation4 + $0x4], 16  ;;  %s509_s22 = sld [smem:[#allocation8 + %s470_s30]] }
  0x71   : > { %s510_s24 = scalar_lea.vmem %s1534_s6, %s509_s22 }
  0x72   : > { %v527_v9 = vld [vmem:[%s510_s24] sm:$0x1] }
  0x73   : > { %528 = vst [vmem:[#allocation3 + $0x4] sm:$0x1] %v527_v9 }
  0x74   : > { %546 = vsyncadd [#allocation5 + $0x4], 16  ;;  %s547_s25 = sadd.s32 5, %s1416_s20 }
  0x75   : > { %s548_s19 = sld [smem:[#allocation7 + %s547_s25]] }
  0x7b   : > { %s549_s29 = scalar_lea.vmem %s1533_s5, %s548_s19 }
  0x7c   : > { %v566_v10 = vld [vmem:[%s549_s29] sm:$0x1] }
  0x7d   : > { %567 = vst [vmem:[#allocation2 + $0x5] sm:$0x1] %v566_v10 }
  0x7e   : > { %585 = vsyncadd [#allocation4 + $0x5], 16  ;;  %s586_s1 = sld [smem:[#allocation8 + %s547_s25]] }
  0x84   : > { %s587_s8 = scalar_lea.vmem %s1534_s6, %s586_s1 }
  0x85   : > { %v604_v11 = vld [vmem:[%s587_s8] sm:$0x1] }
  0x86   : > { %605 = vst [vmem:[#allocation3 + $0x5] sm:$0x1] %v604_v11 }
  0x87   : > { %623 = vsyncadd [#allocation5 + $0x5], 16  ;;  %s624_s14 = sadd.s32 6, %s1416_s20 }
  0x88   : > { %s625_s22 = sld [smem:[#allocation7 + %s624_s14]] }
  0x8e   : > { %s626_s24 = scalar_lea.vmem %s1533_s5, %s625_s22 }
  0x8f   : > { %v643_v12 = vld [vmem:[%s626_s24] sm:$0x1] }
  0x90   : > { %644 = vst [vmem:[#allocation2 + $0x6] sm:$0x1] %v643_v12 }
  0x91   : > { %662 = vsyncadd [#allocation4 + $0x6], 16  ;;  %s663_s19 = sld [smem:[#allocation8 + %s624_s14]] }
  0x97   : > { %s664_s27 = scalar_lea.vmem %s1534_s6, %s663_s19 }
  0x98   : > { %v681_v13 = vld [vmem:[%s664_s27] sm:$0x1] }
  0x99   : > { %682 = vst [vmem:[#allocation3 + $0x6] sm:$0x1] %v681_v13 }
  0x9a   : > { %700 = vsyncadd [#allocation5 + $0x6], 16  ;;  %s701_s29 = sadd.s32 7, %s1416_s20 }
  0x9b   : > { %s702_s1 = sld [smem:[#allocation7 + %s701_s29]] }
  0xa1   : > { %s703_s8 = scalar_lea.vmem %s1533_s5, %s702_s1 }
  0xa2   : > { %v720_v14 = vld [vmem:[%s703_s8] sm:$0x1] }
  0xa3   : > { %721 = vst [vmem:[#allocation2 + $0x7] sm:$0x1] %v720_v14 }
  0xa4   : > { %739 = vsyncadd [#allocation4 + $0x7], 16  ;;  %s740_s22 = sld [smem:[#allocation8 + %s701_s29]] }
  0xaa   : > { %s741_s15 = scalar_lea.vmem %s1534_s6, %s740_s22 }
  0xab   : > { %v758_v15 = vld [vmem:[%s741_s15] sm:$0x1] }
  0xac   : > { %759 = vst [vmem:[#allocation3 + $0x7] sm:$0x1] %v758_v15 }
  0xad   : > { %777 = vsyncadd [#allocation5 + $0x7], 16 }
  0xae   : > { %1269 = dma.done.wait [#allocation4], 16 }
  0xaf   : > { %1270 = vsyncadd [#allocation4], 4294967280 }
  0xb0   : > { %1271 = dma.done.wait [#allocation5], 16 }
  0xb1   : > { %1272 = vsyncadd [#allocation5], 4294967280 }
  0xb2   : > { %1273 = dma.done.wait [#allocation4 + $0x1], 16 }
  0xb3   : > { %1274 = vsyncadd [#allocation4 + $0x1], 4294967280 }
  0xb4   : > { %1275 = dma.done.wait [#allocation5 + $0x1], 16 }
  0xb5   : > { %1276 = vsyncadd [#allocation5 + $0x1], 4294967280 }
  0xb6   : > { %1277 = dma.done.wait [#allocation4 + $0x2], 16 }
  0xb7   : > { %1278 = vsyncadd [#allocation4 + $0x2], 4294967280 }
  0xb8   : > { %1279 = dma.done.wait [#allocation5 + $0x2], 16 }
  0xb9   : > { %1280 = vsyncadd [#allocation5 + $0x2], 4294967280 }
  0xba   : > { %1281 = dma.done.wait [#allocation4 + $0x3], 16 }
  0xbb   : > { %1282 = vsyncadd [#allocation4 + $0x3], 4294967280 }
  0xbc   : > { %1283 = dma.done.wait [#allocation5 + $0x3], 16 }
  0xbd   : > { %1284 = vsyncadd [#allocation5 + $0x3], 4294967280 }
  0xbe   : > { %1285 = dma.done.wait [#allocation4 + $0x4], 16 }
  0xbf   : > { %1286 = vsyncadd [#allocation4 + $0x4], 4294967280 }
  0xc0   : > { %1287 = dma.done.wait [#allocation5 + $0x4], 16 }
  0xc1   : > { %1288 = vsyncadd [#allocation5 + $0x4], 4294967280 }
  0xc2   : > { %1289 = dma.done.wait [#allocation4 + $0x5], 16 }
  0xc3   : > { %1290 = vsyncadd [#allocation4 + $0x5], 4294967280 }
  0xc4   : > { %1291 = dma.done.wait [#allocation5 + $0x5], 16 }
  0xc5   : > { %1292 = vsyncadd [#allocation5 + $0x5], 4294967280 }
  0xc6   : > { %1293 = dma.done.wait [#allocation4 + $0x6], 16 }
  0xc7   : > { %1294 = vsyncadd [#allocation4 + $0x6], 4294967280 }
  0xc8   : > { %1295 = dma.done.wait [#allocation5 + $0x6], 16 }
  0xc9   : > { %1296 = vsyncadd [#allocation5 + $0x6], 4294967280 }
  0xca   : > { %1297 = dma.done.wait [#allocation4 + $0x7], 16 }
  0xcb   : > { %1298 = vsyncadd [#allocation4 + $0x7], 4294967280 }
  0xcc   : > { %1299 = dma.done.wait [#allocation5 + $0x7], 16 }
  0xcd   : > { %1300 = vsyncadd [#allocation5 + $0x7], 4294967280  ;;  %v827_v16 = vld [vmem:[#allocation2] sm:$0xff]  ;;  %v828_v17 = vld [vmem:[#allocation3] sm:$0xff]  ;;  %vm834_vm0 = vcmask 261120   ;;  %v1323_v22 = vmov 32.0   ;;  %s884_s1 = scalar_lea.hbm %s1535_s7, %s1416_s20 }
  0xce   : > { %v830_v18 = vld [vmem:[%s1530_s2] sm:$0xff]  ;;  %v829_v19 = vadd.f32 %v828_v17, %v827_v16  ;;  %1195 = vrcp.f32 %v1323_v22  ;;  %s886_s8 = sshll.u32 %s165_s26, 4  ;;  %s888_s22 = sshll.u32 %s884_s1, 4  ;;  %s887_s8 = int_to_ptr.vmem [resolvable:$true] %s886_s8  ;;  %s889_s22 = int_to_ptr.hbm [resolvable:$true] %s888_s22 }
  0xcf   : > { %v1193_v43 = vld [vmem:[%s1531_s3] ss:$0 sm:$0xff]  ;;  %s1540_s23 = sand.u32 1, %s1311_s10   ;;  %s1237_s20 = sshra.s32 %s889_s22, 4  ;;  %s1238_s20 = int_to_ptr.hbm [resolvable:$true] %s1237_s20 }
  0xd0   : > { %v831_v20 = vadd.f32 %v830_v18, %v829_v19  ;;  %v1194_v46 = vld [vmem:[%s1532_s4] ss:$0 sm:$0xff]  ;;  %s874_s14 = scalar_lea.sflag [#allocation10], %s1540_s23  ;;  %s1239_s15 = scalar_lea.hbm %s1238_s20, 8 }
  0xd1   : > { %p1240_p10 = scmp.ne.s32.totalorder %s1238_s20, %s1239_s15  ;;  %s1243_s28 = scalar_lea.hbm %s1535_s7, 16 }
  0xd2   : > { %v835_v21 = vsel %vm834_vm0, %v831_v20, 0.0  ;;  %p1244_p13 = scmp.lt.s32.totalorder %s1238_s20, %s1535_s7  ;;  %p1245_p0 = scmp.lt.s32.totalorder %s1243_s28, %s1239_s15 }
  0xd3   : > { %836 = vadd.xlane.f32.xlu0 %v835_v21  ;;  %p1241_p11 = pnand %p1240_p10, %p1405_p5 }
  0xd4   : > { %v1196_v23 = vpop.eup %1195  ;;  %p1246_p1 = por %p1245_p0, %p1244_p13 }
  0xd5   : > { %v839_v24 = vmul.f32 32.0, %v1196_v23  ;;  %vm843_vm1 = vweird.f32 %v1196_v23  ;;  %p1242_p12 = pneg %p1241_p11 }
  0xd7   : > { %v840_v25 = vsub.f32 1.0, %v839_v24  ;;  %p1247_p2 = pnand %p1246_p1, %p1242_p12 }
  0xd9   : > { %v841_v26 = vmul.f32 %v1196_v23, %v840_v25 }
  0xdb   : > { %v842_v27 = vadd.f32 %v1196_v23, %v841_v26 }
  0xdd   : > { %v844_v28 = vsel %vm843_vm1, %v1196_v23, %v842_v27 }
 0x146   : > { %v837_v29 = vpop.xlane.xlu0 %836 }
 0x147   : > { %v845_v30 = vmul.f32 %v844_v28, %v837_v29 }
 0x149   : > { %v846_v31 = vsub.f32 %v831_v20, %v845_v30 }
 0x14b   : > { %v847_v32 = vmul.f32 %v846_v31, %v846_v31 }
 0x14d   : > { %v848_v33 = vsel %vm834_vm0, %v847_v32, 0.0 }
 0x14e   : > { %849 = vadd.xlane.f32.xlu0 %v848_v33 }
 0x1c1   : > { %v850_v34 = vpop.xlane.xlu0 %849 }
 0x1c2   : > { %v851_v35 = vmul.f32 %v850_v34, %v844_v28 }
 0x1c4   : > { %v852_v36 = vadd.f32 1e-12, %v851_v35 }
 0x1c6   : > { %1197 = vrsqrt.f32 %v852_v36  ;;  %vm859_vm3 = vweird.f32 %v852_v36 }
 0x1cc   : > { %v1198_v37 = vpop.eup %1197 }
 0x1cd   : > { %v854_v38 = vmul.f32 %v1198_v37, %v852_v36  ;;  %vm860_vm2 = vweird.f32 %v1198_v37 }
 0x1ce   : > { %vm861_vm4 = vmor %vm859_vm3, %vm860_vm2 }
 0x1cf   : > { %v855_v39 = vmul.f32 %v1198_v37, %v854_v38 }
 0x1d1   : > { %v856_v40 = vmul.f32 0.5, %v855_v39 }
 0x1d3   : > { %v857_v41 = vsub.f32 1.5, %v856_v40 }
 0x1d5   : > { %v858_v42 = vmul.f32 %v1198_v37, %v857_v41 }
 0x1d7   : > { %v862_v44 = vsel %vm861_vm4, %v1198_v37, %v858_v42 }
 0x1d8   : > { %v863_v45 = vmul.f32 %v862_v44, %v846_v31 }
 0x1da   : > { %v867_v47 = vmul.f32 %v1193_v43, %v863_v45 }
 0x1dc   : > { %v871_v48 = vadd.f32 %v1194_v46, %v867_v47 }
 0x1de   : > { %872 = vst.msk [vmem:[%s165_s26] sm:$0xff] %vm834_vm0, %v871_v48 }
 0x1df   : > { %1250 = shalt.err (!%p1247_p2)
}
 0x1e0   : > { %1151 = dma.vmem_to_hbm [thread:$0]  (%p1405_p5), %s887_s8, 128, %s889_s22, %s874_s14  }
 0x1e1 PF: > { %p1157_p3 = scmp.ge.s32.totalorder %s1319_s11, 2  ;;  %s900_s21 = sand.u32 1, %s1307_s9  }
 0x1e2   : > { %s901_s26 = scalar_lea.sflag [#allocation10], %s900_s21 }
 0x1e3   : > { %p1154_p4 = pnand %p1157_p3, %p1409_p6 }
 0x1e5   : > { %p1155_p7 = pneg %p1154_p4 }
 0x1e7   : > { %1302 = dma.done.wait (%p1155_p7), %s901_s26, 128  }
 0x1e8   : > { %1304 = vsyncadd (%p1155_p7), %s901_s26, 4294967168  ;;  %p30_p8 = scmp.ge.s32.totalorder %s1393_s13, 4   ;;  %s1541_s9 = smov %s1311_s10 }
 0x1e9   : > { %s1542_s10 = smov %s1315_s0  ;;  %s1543_s0 = smov %s1403_s16 }
 0x1ea   : > { %s1544_s11 = smov %s1393_s13  ;;  %32 = sbr.rel (!%p30_p8) target bundleno = 10 (0xa), region = 666 }
 0x1ef   :  { %907 = vsyncpa [#allocation10], 1 }
 0x1f0   :  { %909 = vsyncpa [#allocation10 + $0x1], 1 }
 0x1f1   :  { %910 = vsyncmov [#allocation4] }
 0x1f4   :  { %s911_s11 = vpop.sfrf %910 }
 0x1f5   :  { %p1135_p5 = scmp.ne.s32.totalorder %s911_s11, 0 }
 0x1f7   :  { %915 = shalt.err (%p1135_p5)  }
 0x1f8   :  { %917 = vsyncmov [#allocation4 + $0x1] }
 0x1fb   :  { %s918_s17 = vpop.sfrf %917 }
 0x1fc   :  { %p1136_p6 = scmp.ne.s32.totalorder %s918_s17, 0 }
 0x1fe   :  { %922 = shalt.err (%p1136_p6)  }
 0x1ff   :  { %924 = vsyncmov [#allocation4 + $0x2] }
 0x202   :  { %s925_s18 = vpop.sfrf %924 }
 0x203   :  { %p1137_p9 = scmp.ne.s32.totalorder %s925_s18, 0 }
 0x205   :  { %929 = shalt.err (%p1137_p9)  }
 0x206   :  { %931 = vsyncmov [#allocation4 + $0x3] }
 0x209   :  { %s932_s29 = vpop.sfrf %931 }
 0x20a   :  { %p1138_p10 = scmp.ne.s32.totalorder %s932_s29, 0 }
 0x20c   :  { %936 = shalt.err (%p1138_p10)  }
 0x20d   :  { %938 = vsyncmov [#allocation4 + $0x4] }
 0x210   :  { %s939_s13 = vpop.sfrf %938 }
 0x211   :  { %p1139_p11 = scmp.ne.s32.totalorder %s939_s13, 0 }
 0x213   :  { %943 = shalt.err (%p1139_p11)  }
 0x214   :  { %945 = vsyncmov [#allocation4 + $0x5] }
 0x217   :  { %s946_s2 = vpop.sfrf %945 }
 0x218   :  { %p1140_p12 = scmp.ne.s32.totalorder %s946_s2, 0 }
 0x21a   :  { %950 = shalt.err (%p1140_p12)  }
 0x21b   :  { %952 = vsyncmov [#allocation4 + $0x6] }
 0x21e   :  { %s953_s3 = vpop.sfrf %952 }
 0x21f   :  { %p1141_p13 = scmp.ne.s32.totalorder %s953_s3, 0 }
 0x221   :  { %957 = shalt.err (%p1141_p13)  }
 0x222   :  { %959 = vsyncmov [#allocation4 + $0x7] }
 0x225   :  { %s960_s4 = vpop.sfrf %959 }
 0x226   :  { %p1142_p0 = scmp.ne.s32.totalorder %s960_s4, 0 }
 0x228   :  { %964 = shalt.err (%p1142_p0)  }
 0x229   :  { %965 = vsyncmov [#allocation5] }
 0x22c   :  { %s966_s5 = vpop.sfrf %965 }
 0x22d   :  { %p1143_p1 = scmp.ne.s32.totalorder %s966_s5, 0 }
 0x22f   :  { %970 = shalt.err (%p1143_p1)  }
 0x230   :  { %972 = vsyncmov [#allocation5 + $0x1] }
 0x233   :  { %s973_s6 = vpop.sfrf %972 }
 0x234   :  { %p1144_p2 = scmp.ne.s32.totalorder %s973_s6, 0 }
 0x236   :  { %977 = shalt.err (%p1144_p2)  }
 0x237   :  { %979 = vsyncmov [#allocation5 + $0x2] }
 0x23a   :  { %s980_s7 = vpop.sfrf %979 }
 0x23b   :  { %p1145_p3 = scmp.ne.s32.totalorder %s980_s7, 0 }
 0x23d   :  { %984 = shalt.err (%p1145_p3)  }
 0x23e   :  { %986 = vsyncmov [#allocation5 + $0x3] }
 0x241   :  { %s987_s9 = vpop.sfrf %986 }
 0x242   :  { %p1146_p4 = scmp.ne.s32.totalorder %s987_s9, 0 }
 0x244   :  { %991 = shalt.err (%p1146_p4)  }
 0x245   :  { %993 = vsyncmov [#allocation5 + $0x4] }
 0x248   :  { %s994_s10 = vpop.sfrf %993 }
 0x249   :  { %p1147_p7 = scmp.ne.s32.totalorder %s994_s10, 0 }
 0x24b   :  { %998 = shalt.err (%p1147_p7)  }
 0x24c   :  { %1000 = vsyncmov [#allocation5 + $0x5] }
 0x24f   :  { %s1001_s0 = vpop.sfrf %1000 }
 0x250   :  { %p1148_p8 = scmp.ne.s32.totalorder %s1001_s0, 0 }
 0x252   :  { %1005 = shalt.err (%p1148_p8)  }
 0x253   :  { %1007 = vsyncmov [#allocation5 + $0x6] }
 0x256   :  { %s1008_s16 = vpop.sfrf %1007 }
 0x257   :  { %p1149_p5 = scmp.ne.s32.totalorder %s1008_s16, 0 }
 0x259   :  { %1012 = shalt.err (%p1149_p5)  }
 0x25a   :  { %1014 = vsyncmov [#allocation5 + $0x7] }
 0x25d   :  { %s1015_s1 = vpop.sfrf %1014 }
 0x25e   :  { %p1150_p6 = scmp.ne.s32.totalorder %s1015_s1, 0 }
 0x260   :  { %1019 = shalt.err (%p1150_p6)  }

</bundles_post_ra>
